<compile_context>
chip_gen: v7x
topology: tpu7x:2x2x1
jax: 0.10.0
libtpu: 0.0.40
codegen_flags: <defaults>
</compile_context>

<pallas_src>
import functools

import jax
import jax.numpy as jnp
from jax import lax
from jax.experimental import pallas as pl
from jax.experimental.pallas import tpu as pltpu


_LANE = 128
_SUBLANE = 8


def _round_up(x, m):
    return (x + m - 1) // m * m


def _chip_config():
    """Generation-aware sizes (v5e/v6e: 128 MiB VMEM; v7x: 64 MiB per TC)."""
    try:
        vmem = int(pltpu.get_tpu_info().vmem_capacity_bytes)
    except Exception:
        vmem = 64 * 1024 * 1024  # conservative default
    if vmem >= 100 * 1024 * 1024:            # v5e / v6e
        return {
            "fused_plane_cap": 14 * 1024 * 1024,   # one (C, HW) plane in VMEM
            "vmem_limit": 80 * 1024 * 1024,        # scoped-VMEM override
            "block_bytes": 4 * 1024 * 1024,        # per-grid-step block target
        }
    return {                                  # v7x
        "fused_plane_cap": 7 * 1024 * 1024,
        "vmem_limit": 44 * 1024 * 1024,
        "block_bytes": 6 * 1024 * 1024,
    }


# ---------------------------------------------------------------------------
# Fused single-pass kernel: pool + 1x1 convs + rescale on an (nb, C, HW) block.
# ---------------------------------------------------------------------------
def _ca_fused_kernel(x_ref, w1_ref, b1_ref, w2_ref, b2_ref, o_ref, *, inv_hw):
    # AdaptiveAvgPool2d(1): block spans the full HW extent, so Mosaic masks any
    # layout padding of the last dim automatically.  Accumulate in f32.
    avg = jnp.sum(x_ref[...], axis=-1, dtype=jnp.float32) * inv_hw        # (nb, C)

    # conv1 (1x1, C -> Cmid) + ReLU: VPU broadcast-mul-reduce.
    h = jnp.sum(w1_ref[...][None, :, :] * avg[:, None, :], axis=-1) + b1_ref[...]
    h = jnp.maximum(h, 0.0)                                               # (nb, Cmid)

    # conv2 (1x1, Cmid -> C) + sigmoid.
    z = jnp.sum(w2_ref[...][None, :, :] * h[:, None, :], axis=-1) + b2_ref[...]
    y = jax.nn.sigmoid(z)                                                 # (nb, C) f32

    # Channel-wise rescale in x's native dtype.  Re-read the ref (streamed VMEM
    # reload) rather than keeping the pooled load live across the MLP.
    o_ref[...] = x_ref[...] * y[:, :, None].astype(o_ref.dtype)


# ---------------------------------------------------------------------------
# Tiled path kernels (for planes too large for the fused path's VMEM budget).
# ---------------------------------------------------------------------------
def _ca_pool_kernel(x_ref, s_ref, *, hw, thw):
    # Accumulate per-channel sums over HW tiles (reduction axis = last grid axis).
    j = pl.program_id(1)

    @pl.when(j == 0)
    def _():
        s_ref[...] = jnp.zeros_like(s_ref)

    x = x_ref[...]                                            # (1, C, thw)
    if hw % thw != 0:
        # Ragged last tile: lanes past HW hold uninitialized buffer contents.
        col = lax.broadcasted_iota(jnp.int32, x.shape, 2) + j * thw
        x = jnp.where(col < hw, x, 0)
    s_ref[...] += jnp.sum(x, axis=-1, keepdims=True, dtype=jnp.float32)


def _ca_scale_kernel(x_ref, y_ref, o_ref):
    # y_ref block is (1, C, 1): broadcast rescale in native dtype.  No mask is
    # needed for the ragged tile: only the valid region of an edge block is
    # written back to HBM.
    o_ref[...] = x_ref[...] * y_ref[...].astype(o_ref.dtype)


# ---------------------------------------------------------------------------
# Wrapper.
# ---------------------------------------------------------------------------
def ca_layer(x, w1, b1, w2, b2, *, block_bytes=None, force_tiled=False,
             donate_x=False):
    """Channel attention: x * sigmoid(conv2(relu(conv1(avgpool(x))))).

    x: (N, C, H, W); w1: (Cmid, C) (= conv1.weight squeezed); b1: (Cmid,);
    w2: (C, Cmid); b2: (C,).
    """
    N, C, H, W = x.shape
    Cmid = w1.shape[0]
    HW = H * W
    itemsize = jnp.dtype(x.dtype).itemsize

    cfg = _chip_config()
    if block_bytes is None:
        block_bytes = cfg["block_bytes"]
    vmem_limit = cfg["vmem_limit"]
    fused_plane_cap = cfg["fused_plane_cap"]

    w1_f = w1.astype(jnp.float32)
    w2_f = w2.astype(jnp.float32)
    b1_2d = b1.reshape(1, Cmid).astype(jnp.float32)
    b2_2d = b2.reshape(1, C).astype(jnp.float32)

    x2 = x.reshape(N, C, HW)
    alias = {0: 0} if donate_x else {}

    # VMEM footprint of one (C, HW) plane after layout padding.
    plane_vmem = _round_up(C, _SUBLANE) * _round_up(HW, _LANE) * itemsize
    use_tiled = force_tiled or plane_vmem > fused_plane_cap

    if not use_tiled:
        # --------------- fused single pass: 1 HBM read + 1 HBM write ---------------
        plane_bytes = C * HW * itemsize
        # Several batch planes per grid step (~block_bytes per block), but keep the
        # grid at >= min(N, 4) steps so megacore sharding / DMA pipelining survive.
        nb = max(1, min(N, block_bytes // max(1, plane_bytes), pl.cdiv(N, 4)))
        grid0 = pl.cdiv(N, nb)
        # TODO(synk): when N == 1 the fused grid has a single step (one v7x core
        # idle); a second HW grid axis with per-chunk partial pooling would fix it.

        out = pl.pallas_call(
            functools.partial(_ca_fused_kernel, inv_hw=1.0 / HW),
            out_shape=jax.ShapeDtypeStruct((N, C, HW), x.dtype),
            grid_spec=pltpu.PrefetchScalarGridSpec(
                num_scalar_prefetch=0,
                grid=(grid0,),
                in_specs=[
                    pl.BlockSpec((nb, C, HW), lambda i: (i, 0, 0)),
                    pl.BlockSpec((Cmid, C), lambda i: (0, 0)),
                    pl.BlockSpec((1, Cmid), lambda i: (0, 0)),
                    pl.BlockSpec((C, Cmid), lambda i: (0, 0)),
                    pl.BlockSpec((1, C), lambda i: (0, 0)),
                ],
                out_specs=pl.BlockSpec((nb, C, HW), lambda i: (i, 0, 0)),
            ),
            compiler_params=pltpu.CompilerParams(
                dimension_semantics=("parallel",),
                vmem_limit_bytes=vmem_limit,
            ),
            input_output_aliases=alias,
        )(x2, w1_f, b1_2d, w2_f, b2_2d)
        return out.reshape(N, C, H, W)

    # ------------- tiled two-pass path (VMEM-safe for huge planes) -------------
    thw = max(_LANE, (block_bytes // max(1, C * itemsize)) // _LANE * _LANE)
    thw = min(thw, _round_up(HW, _LANE))
    n_hw = pl.cdiv(HW, thw)

    # Pass 1: pooled per-channel sums accumulated over HW tiles (ragged tail
    # masked in-kernel; x is not padded or copied).
    sums = pl.pallas_call(
        functools.partial(_ca_pool_kernel, hw=HW, thw=thw),
        out_shape=jax.ShapeDtypeStruct((N, C, 1), jnp.float32),
        grid_spec=pltpu.PrefetchScalarGridSpec(
            num_scalar_prefetch=0,
            grid=(N, n_hw),
            in_specs=[pl.BlockSpec((1, C, thw), lambda i, j: (i, 0, j))],
            out_specs=pl.BlockSpec((1, C, 1), lambda i, j: (i, 0, 0)),
        ),
        compiler_params=pltpu.CompilerParams(
            dimension_semantics=("parallel", "arbitrary"),
            vmem_limit_bytes=vmem_limit,
        ),
    )(x2)
    # TODO(synk): on v7x with N < 2, emit per-HW-chunk partial sums (both grid
    # axes 'parallel') and finish the reduction in XLA so both TensorCores
    # stream x during pass 1.

    # Tiny squeeze/excite MLP as ordinary XLA matmuls (negligible cost).
    avg = sums[:, :, 0] * (1.0 / HW)                          # (N, C) f32
    h = jnp.maximum(avg @ w1_f.T + b1_2d, 0.0)                # (N, Cmid)
    yv = jax.nn.sigmoid(h @ w2_f.T + b2_2d)                   # (N, C)
    y3 = yv[:, :, None].astype(jnp.float32)                   # (N, C, 1)

    # Pass 2: channel-wise rescale over HW tiles (both grid axes parallel).
    out = pl.pallas_call(
        _ca_scale_kernel,
        out_shape=jax.ShapeDtypeStruct((N, C, HW), x.dtype),
        grid_spec=pltpu.PrefetchScalarGridSpec(
            num_scalar_prefetch=0,
            grid=(N, n_hw),
            in_specs=[
                pl.BlockSpec((1, C, thw), lambda i, j: (i, 0, j)),
                pl.BlockSpec((1, C, 1), lambda i, j: (i, 0, 0)),
            ],
            out_specs=pl.BlockSpec((1, C, thw), lambda i, j: (i, 0, j)),
        ),
        compiler_params=pltpu.CompilerParams(
            dimension_semantics=("parallel", "parallel"),
            vmem_limit_bytes=vmem_limit,
        ),
        input_output_aliases=alias,
    )(x2, y3)
    return out.reshape(N, C, H, W)


if __name__ == "__main__":
    key = jax.random.PRNGKey(0)
    N, C, H, W = 2, 32, 16, 16
    reduction = 16
    Cmid = C // reduction  # = 2

    k = jax.random.split(key, 5)
    x = jax.random.normal(k[0], (N, C, H, W), dtype=jnp.float32)
    # Conv2d 1x1 weights flattened to 2-D, biases as 1-D (like PyTorch).
    w1 = jax.random.normal(k[1], (Cmid, C), dtype=jnp.float32) * 0.1
    b1 = jax.random.normal(k[2], (Cmid,), dtype=jnp.float32) * 0.1
    w2 = jax.random.normal(k[3], (C, Cmid), dtype=jnp.float32) * 0.1
    b2 = jax.random.normal(k[4], (C,), dtype=jnp.float32) * 0.1

    # pure-JAX reference
    avg = jnp.mean(x, axis=(2, 3))                            # (N, C)
    h = jnp.maximum(avg @ w1.T + b1[None, :], 0.0)            # (N, Cmid)
    yv = jax.nn.sigmoid(h @ w2.T + b2[None, :])               # (N, C)
    ref = x * yv[:, :, None, None]

    # Fused single-pass path (default for these sizes).
    out = ca_layer(x, w1, b1, w2, b2)
    jax.block_until_ready(out)
    assert jnp.allclose(out, ref, atol=1e-5, rtol=1e-5), "fused path mismatch"

    # Tiled two-pass path, forced with a small HW tile so the cross-tile
    # pooled-sum accumulation is actually exercised.
    out_t = ca_layer(x, w1, b1, w2, b2, block_bytes=C * _LANE * 4,
                     force_tiled=True)
    jax.block_until_ready(out_t)
    assert jnp.allclose(out_t, ref, atol=1e-5, rtol=1e-5), "tiled path mismatch"

    print("KERNEL_OK")
</pallas_src>

<mosaic_0001>
module attributes {stable_mosaic.version = 11 : i64} {
  func.func @_ca_fused_kernel(%arg0: i32, %arg1: memref<1x32x256xf32, #tpu.memory_space<vmem>>, %arg2: memref<2x32xf32, #tpu.memory_space<vmem>>, %arg3: memref<1x2xf32, #tpu.memory_space<vmem>>, %arg4: memref<32x2xf32, #tpu.memory_space<vmem>>, %arg5: memref<1x32xf32, #tpu.memory_space<vmem>>, %arg6: memref<1x32x256xf32, #tpu.memory_space<vmem>>) attributes {dimension_semantics = [#tpu.dimension_semantics<parallel>], iteration_bounds = array<i64: 2>, scalar_prefetch = 0 : i64, scratch_operands = 0 : i64, tpu.core_type = #tpu.core_type<tc>, window_params = [{transform_indices = @transform_0, window_bounds = array<i64: 1, 32, 256>}, {pipeline_mode = #tpu.pipeline_mode<synchronous>, transform_indices = @transform_1, window_bounds = array<i64: 2, 32>}, {pipeline_mode = #tpu.pipeline_mode<synchronous>, transform_indices = @transform_2, window_bounds = array<i64: 1, 2>}, {pipeline_mode = #tpu.pipeline_mode<synchronous>, transform_indices = @transform_3, window_bounds = array<i64: 32, 2>}, {pipeline_mode = #tpu.pipeline_mode<synchronous>, transform_indices = @transform_4, window_bounds = array<i64: 1, 32>}, {transform_indices = @transform_5, window_bounds = array<i64: 1, 32, 256>}]} {
    %c0 = arith.constant 0 : index
    %c0_0 = arith.constant 0 : index
    %c0_1 = arith.constant 0 : index
    %0 = vector.load %arg1[%c0, %c0_0, %c0_1] : memref<1x32x256xf32, #tpu.memory_space<vmem>>, vector<1x32x256xf32>
    %cst = arith.constant dense<0.000000e+00> : vector<1x32xf32>
    %1 = vector.multi_reduction <add>, %0, %cst [2] : vector<1x32x256xf32> to vector<1x32xf32>
    %cst_2 = arith.constant 3.906250e-03 : f32
    %2 = vector.broadcast %cst_2 : f32 to vector<1x32xf32>
    %3 = arith.mulf %1, %2 : vector<1x32xf32>
    %c0_3 = arith.constant 0 : index
    %c0_4 = arith.constant 0 : index
    %4 = vector.load %arg2[%c0_3, %c0_4] : memref<2x32xf32, #tpu.memory_space<vmem>>, vector<2x32xf32>
    %5 = vector.shape_cast %4 : vector<2x32xf32> to vector<1x2x32xf32>
    %6 = vector.shape_cast %3 : vector<1x32xf32> to vector<1x1x32xf32>
    %7 = vector.broadcast %6 : vector<1x1x32xf32> to vector<1x2x32xf32>
    %8 = arith.mulf %5, %7 : vector<1x2x32xf32>
    %cst_5 = arith.constant dense<0.000000e+00> : vector<1x2xf32>
    %9 = vector.multi_reduction <add>, %8, %cst_5 [2] : vector<1x2x32xf32> to vector<1x2xf32>
    %c0_6 = arith.constant 0 : index
    %c0_7 = arith.constant 0 : index
    %10 = vector.load %arg3[%c0_6, %c0_7] : memref<1x2xf32, #tpu.memory_space<vmem>>, vector<1x2xf32>
    %11 = arith.addf %9, %10 : vector<1x2xf32>
    %cst_8 = arith.constant 0.000000e+00 : f32
    %12 = vector.broadcast %cst_8 : f32 to vector<1x2xf32>
    %13 = arith.maximumf %11, %12 : vector<1x2xf32>
    %c0_9 = arith.constant 0 : index
    %c0_10 = arith.constant 0 : index
    %14 = vector.load %arg4[%c0_9, %c0_10] : memref<32x2xf32, #tpu.memory_space<vmem>>, vector<32x2xf32>
    %15 = vector.shape_cast %14 : vector<32x2xf32> to vector<1x32x2xf32>
    %16 = vector.shape_cast %13 : vector<1x2xf32> to vector<1x1x2xf32>
    %17 = vector.broadcast %16 : vector<1x1x2xf32> to vector<1x32x2xf32>
    %18 = arith.mulf %15, %17 : vector<1x32x2xf32>
    %cst_11 = arith.constant dense<0.000000e+00> : vector<1x32xf32>
    %19 = vector.multi_reduction <add>, %18, %cst_11 [2] : vector<1x32x2xf32> to vector<1x32xf32>
    %c0_12 = arith.constant 0 : index
    %c0_13 = arith.constant 0 : index
    %20 = vector.load %arg5[%c0_12, %c0_13] : memref<1x32xf32, #tpu.memory_space<vmem>>, vector<1x32xf32>
    %21 = arith.addf %19, %20 : vector<1x32xf32>
    %22 = arith.negf %21 : vector<1x32xf32>
    %23 = math.exp %22 : vector<1x32xf32>
    %cst_14 = arith.constant 1.000000e+00 : f32
    %24 = vector.broadcast %cst_14 : f32 to vector<1x32xf32>
    %25 = arith.addf %24, %23 : vector<1x32xf32>
    %26 = arith.divf %24, %25 : vector<1x32xf32>
    %c0_15 = arith.constant 0 : index
    %c0_16 = arith.constant 0 : index
    %c0_17 = arith.constant 0 : index
    %27 = vector.load %arg1[%c0_15, %c0_16, %c0_17] : memref<1x32x256xf32, #tpu.memory_space<vmem>>, vector<1x32x256xf32>
    %28 = vector.shape_cast %26 : vector<1x32xf32> to vector<1x32x1xf32>
    %29 = vector.broadcast %28 : vector<1x32x1xf32> to vector<1x32x256xf32>
    %30 = arith.mulf %27, %29 : vector<1x32x256xf32>
    %c0_18 = arith.constant 0 : index
    %c0_19 = arith.constant 0 : index
    %c0_20 = arith.constant 0 : index
    %31 = vector.load %arg6[%c0_18, %c0_19, %c0_20] : memref<1x32x256xf32, #tpu.memory_space<vmem>>, vector<1x32x256xf32>
    tpu.vector_store %arg6[%c0_18, %c0_19, %c0_20], %30 {strides = array<i32>} : memref<1x32x256xf32, #tpu.memory_space<vmem>>, vector<1x32x256xf32>,
    return
  }
  func.func @transform_0(%arg0: i32) -> (i32, i32, i32) {
    %c0_i32 = arith.constant 0 : i32
    %c0_i32_0 = arith.constant 0 : i32
    %c0_i32_1 = arith.constant 0 : i32
    return %arg0, %c0_i32, %c0_i32_0 : i32, i32, i32
  }
  func.func @transform_1(%arg0: i32) -> (i32, i32) {
    %c0_i32 = arith.constant 0 : i32
    %c0_i32_0 = arith.constant 0 : i32
    %c0_i32_1 = arith.constant 0 : i32
    return %c0_i32, %c0_i32_0 : i32, i32
  }
  func.func @transform_2(%arg0: i32) -> (i32, i32) {
    %c0_i32 = arith.constant 0 : i32
    %c0_i32_0 = arith.constant 0 : i32
    %c0_i32_1 = arith.constant 0 : i32
    return %c0_i32, %c0_i32_0 : i32, i32
  }
  func.func @transform_3(%arg0: i32) -> (i32, i32) {
    %c0_i32 = arith.constant 0 : i32
    %c0_i32_0 = arith.constant 0 : i32
    %c0_i32_1 = arith.constant 0 : i32
    return %c0_i32, %c0_i32_0 : i32, i32
  }
  func.func @transform_4(%arg0: i32) -> (i32, i32) {
    %c0_i32 = arith.constant 0 : i32
    %c0_i32_0 = arith.constant 0 : i32
    %c0_i32_1 = arith.constant 0 : i32
    return %c0_i32, %c0_i32_0 : i32, i32
  }
  func.func @transform_5(%arg0: i32) -> (i32, i32, i32) {
    %c0_i32 = arith.constant 0 : i32
    %c0_i32_0 = arith.constant 0 : i32
    %c0_i32_1 = arith.constant 0 : i32
    return %arg0, %c0_i32, %c0_i32_0 : i32, i32, i32
  }
}

</mosaic_0001>

<bundles_post_ra>
// kernel: tpu_custom_call.1
= control target key start
LH: loop header
LB: loop body
LE: loop exit
PB: predicated region body
PF: predicated region fallthrough
CT: control target
= control target key end

     0   :  { %10 = vsyncpa [#allocation3], 0  ;;  %s980_s0 = inlined_call_operand.hbm [shape: f32[2,32,256], index: 0, kind: input, shape index: {}]   ;;  %s981_s1 = inlined_call_operand.vmem [shape: f32[2,32], index: 1, kind: input, shape index: {}]   ;;  %s982_s2 = inlined_call_operand.vmem [shape: f32[1,2], index: 2, kind: input, shape index: {}]   ;;  %s983_s3 = inlined_call_operand.vmem [shape: f32[32,2], index: 3, kind: input, shape index: {}]   ;;  %s984_s4 = inlined_call_operand.vmem [shape: f32[1,32], index: 4, kind: input, shape index: {}]   ;;  %s985_s5 = inlined_call_operand.hbm [shape: f32[2,32,256], index: 5, kind: output, shape index: {}]  }
   0x1   :  { %12 = vsyncpa [#allocation3 + $0x1], 0 }
   0x2   :  { %13 = vsyncpa [#allocation4], 0 }
   0x3   :  { %15 = vsyncpa [#allocation4 + $0x1], 0  ;;  %s761_s18 = smov 0   ;;  %s763_s19 = smov 0  }
   0x4   :  { %s765_s20 = smov 0   ;;  %s767_s21 = smov 0  }
   0x5 LB: > { %s782_s22 = sadd.s32 4294967295, %s722_s21   ;;  %s535_s23 = sadd.s32 4294967294, %s722_s21   ;;  %s722_s21 = sphi %s767_s21, %s998_s21   ;;  %s718_s20 = sphi %s765_s20, %s997_s20   ;;  %s714_s19 = sphi %s763_s19, %s996_s19   ;;  %s710_s18 = sphi %s761_s18, %s995_s18  }
   0x6   : > { %s786_s24 = sadd.s32 1, %s722_s21   ;;  %s28_s25 = sadd.s32 1, %s718_s20 }
   0x7   : > { %s25_s26 = ssub.s32 %s722_s21, %s786_s24  ;;  %p35_p0 = scmp.ne.s32.totalorder %s718_s20, %s714_s19 }
   0x8   : > { %p26_p1 = scmp.eq.s32.totalorder %s25_s26, 0  ;;  %p36_p2 = scmp.eq.s32.totalorder %s722_s21, 0 }
   0x9   : > { %p41_p3 = scmp.ne.s32.totalorder %s714_s19, %s710_s18  ;;  %p42_p4 = scmp.eq.s32.totalorder %s782_s22, 0 }
   0xa   : > { %s798_s27 = scalar_select %p26_p1, %s718_s20, %s28_s25  }
   0xb   : > { %p800_p5 = por %p36_p2, %p35_p0  ;;  %p804_p6 = por %p42_p4, %p41_p3 }
   0xc   : > { %p149_p7 = scmp.eq.s32.totalorder %s782_s22, 1  ;;  %p155_p8 = scmp.eq.s32.totalorder %s535_s23, 1 }
   0xd   : > { %p569_p10 = scmp.lt.s32.totalorder %s722_s21, 2  ;;  %s187_s7 = sand.u32 1, %s718_s20  }
   0xe   : > { %p811_p11 = por %p149_p7, %p35_p0  ;;  %p815_p12 = por %p155_p8, %p41_p3 }
   0xf   : > { %s555_s8 = sshll.u32 %s722_s21, 10  ;;  %s538_s9 = sshll.u32 %s187_s7, 6 }
  0x10   : > { %s989_s30 = scalar_select %p811_p11, 1, 0 }
  0x11   : > { %s990_s6 = scalar_select %p815_p12, 1, 0 }
  0x12   : > { %s824_s12 = scalar_lea.hbm %s980_s0, %s555_s8  ;;  %s191_s13 = scalar_lea.vmem [#allocation2], %s538_s9 }
  0x13   : > { %s198_s14 = sshll.u32 %s191_s13, 4  ;;  %p828_p13 = pnand %p569_p10, %p800_p5  ;;  %s832_s14 = int_to_ptr.vmem [resolvable:$true] %s198_s14 }
  0x14   : > { %s834_s16 = scalar_lea.sflag [#allocation3], %s187_s7  ;;  %s626_s17 = scalar_lea.hbm %s824_s12, 1024 }
  0x15   : > { %p627_p0 = scmp.ne.s32.totalorder %s824_s12, %s626_s17  ;;  %p628_p1 = pneg %p828_p13 }
  0x16   : > { %s631_s26 = scalar_lea.hbm %s980_s0, 2048  ;;  %p632_p4 = scmp.lt.u32.totalorder %s824_s12, %s980_s0 }
  0x17   : > { %p629_p2 = pnand %p628_p1, %p627_p0  ;;  %p633_p5 = scmp.lt.u32.totalorder %s631_s26, %s626_s17 }
  0x18   : > { %p635_p8 = scmp.lt.u32.totalorder %s626_s17, %s824_s12 }
  0x19   : > { %p630_p3 = pneg %p629_p2  ;;  %p634_p7 = por %p633_p5, %p632_p4 }
  0x1b   : > { %p636_p10 = por %p635_p8, %p634_p7 }
  0x1d   : > { %p637_p9 = pnand %p636_p10, %p630_p3 }
  0x1f   : > { %640 = shalt.err (!%p637_p9)
}
  0x20   : > { %s641_s7 = scalar_lea.vmem %s832_s14, 1024  ;;  %s724_s9 = smov [#allocation2]  }
  0x21   : > { %p642_p0 = scmp.ne.s32.totalorder %s832_s14, %s641_s7  ;;  %s646_s10 = sshll.u32 %s724_s9, 4  ;;  %s647_s10 = int_to_ptr.vmem [resolvable:$false] %s646_s10 }
  0x22   : > { %s648_s11 = scalar_lea.vmem %s647_s10, 2048  ;;  %p649_p11 = scmp.lt.s32.totalorder %s832_s14, %s647_s10 }
  0x23   : > { %p644_p2 = pnand %p642_p0, %p628_p1  ;;  %p650_p4 = scmp.lt.s32.totalorder %s648_s11, %s641_s7 }
  0x25   : > { %p645_p12 = pneg %p644_p2  ;;  %p651_p5 = por %p650_p4, %p649_p11 }
  0x27   : > { %p652_p7 = pnand %p651_p5, %p645_p12 }
  0x29   : > { %655 = shalt.err (!%p652_p7)
}
  0x2a   : > { %s725_s13 = smov 256   ;;  %s726_s17 = smov 16  }
  0x2b   : > { %564 = dma.hbm_to_vmem [thread:$0]  (!%p828_p13), %s824_s12, 1024, %s832_s14, %s834_s16, %s725_s13, %s725_s13, %s726_s17  }
  0x2c   : > { %p541_p9 = scmp.ge.s32.totalorder %s722_s21, 1  ;;  %p206_p1 = scmp.lt.s32.totalorder %s722_s21, 3 }
  0x2e   : > { %p207_p3 = pnand %p541_p9, %p206_p1 }
  0x2f   : > { %s865_s23 = sand.u32 (!%p207_p3), 1, %s714_s19  }
  0x30   : > { %210 = sbr.rel (%p207_p3) target bundleno = 822 (0x336), region = 40  ;;  %s542_s25 = sshll.u32 (!%p207_p3), %s865_s23, 6 }
  0x31   : > { %s213_s26 = scalar_lea.sflag (!%p207_p3), [#allocation3], %s865_s23  ;;  %s216_s28 = scalar_lea.vmem (!%p207_p3), [#allocation2], %s542_s25 }
  0x37   : > { %701 = dma.done.wait (%p804_p6), %s213_s26, 1024  }
  0x38   : > { %703 = vsyncadd (%p804_p6), %s213_s26, 4294966272  ;;  %v875_v0 = vld [vmem:[%s216_s28] sm:$0xff]  ;;  %v877_v1 = vld [vmem:[%s216_s28 + $0x8] sm:$0xff]  ;;  %v272_v13 = vlaneseq  ;;  %vm283_vm0 = vcmask 130112   ;;  %vm290_vm1 = vcmask 195712   ;;  %vm297_vm2 = vcmask 261312  }
  0x39   : > { %v879_v2 = vld [vmem:[%s216_s28 + $0x20] sm:$0xff]  ;;  %v251_v3 = vadd.f32 %v877_v1, %v875_v0  ;;  %v883_v4 = vld [vmem:[%s216_s28 + $0x28] sm:$0xff]  ;;  %v885_v5 = vld [vmem:[%s216_s28 + $0x10] sm:$0xff]  ;;  %vm301_vm3 = vcmask 254976   ;;  %v727_v41 = vmov 0   ;;  %vm346_vm4 = vcmask 15360  }
  0x3a   : > { %v887_v6 = vld [vmem:[%s216_s28 + $0x18] sm:$0xff]  ;;  %v257_v7 = vadd.f32 %v883_v4, %v879_v2  ;;  %v891_v8 = vld [vmem:[%s216_s28 + $0x30] sm:$0xff]  ;;  %v544_v12 = vld [vmem:[%s982_s2] ss:$0 sm:$0xff]  ;;  %v273_v14 = vand.u32 127, %v272_v13  ;;  %v275_v15 = vshrl.u32 %v272_v13, 7  ;;  %608 = vset.pattern.permute.xlu0 %v727_v41  ;;  %609 = vset.pattern.permute.xlu1 %v727_v41 }
  0x3b   : > { %v893_v9 = vld [vmem:[%s216_s28 + $0x38] sm:$0xff]  ;;  %252 = vadd.xlane.f32.xlu0 %v251_v3  ;;  %v254_v10 = vadd.f32 %v887_v6, %v885_v5  ;;  %v267_v36 = vld [vmem:[%s981_s1] sm:$0x3]  ;;  %v318_v48 = vld [vmem:[%s983_s3 + $0x8] sm:$0xff]  ;;  %s242_s29 = scalar_lea.vmem [#allocation5], %s542_s25  ;;  %s556_s14 = sshll.u32 %s782_s22, 10 }
  0x3c   : > { %258 = vadd.xlane.f32.xlu1 %v257_v7  ;;  %v260_v11 = vadd.f32 %v893_v9, %v891_v8  ;;  %v278_v16 = vadd.s32 4294967288, %v273_v14  ;;  %v285_v18 = vadd.s32 4294967280, %v273_v14  ;;  %v292_v19 = vadd.s32 4294967272, %v273_v14  ;;  %v545_v42 = vld [vmem:[%s984_s4] ss:$0 sm:$0xff]  ;;  %v319_v51 = vld [vmem:[%s983_s3 + $0x10] sm:$0xff]  ;;  %s934_s16 = scalar_lea.hbm %s985_s5, %s556_s14 }
  0x3d   : > { %v276_v21 = vsub.s32 %v273_v14, %v275_v15  ;;  %v317_v49 = vld [vmem:[%s983_s3] sm:$0xff]  ;;  %v320_v57 = vld [vmem:[%s983_s3 + $0x18] sm:$0xff]  ;;  %s462_s12 = sshll.u32 %s242_s29, 4  ;;  %s449_s22 = scalar_lea.sflag [#allocation4], %s865_s23  ;;  %s929_s12 = int_to_ptr.vmem [resolvable:$true] %s462_s12 }
  0x3e   : > { %v281_v23 = vsub.s32 %v278_v16, %v275_v15  ;;  %v288_v24 = vsub.s32 %v285_v18, %v275_v15  ;;  %v295_v27 = vsub.s32 %v292_v19, %v275_v15  ;;  %s656_s8 = scalar_lea.vmem %s929_s12, 1024  ;;  %p992_p11 = scmp.ne.s32.totalorder %s989_s30, 0 }
  0x3f   : > { %255 = vadd.xlane.f32.xlu0 %v254_v10  ;;  %p657_p6 = scmp.ne.s32.totalorder %s929_s12, %s656_s8  ;;  %s728_s7 = smov [#allocation5]  }
  0x40   : > { %261 = vadd.xlane.f32.xlu1 %v260_v11  ;;  %s660_s9 = sshll.u32 %s728_s7, 4  ;;  %s661_s9 = int_to_ptr.vmem [resolvable:$false] %s660_s9 }
  0x41   : > { %p658_p12 = pnand %p657_p6, %p992_p11  ;;  %s662_s10 = scalar_lea.vmem %s661_s9, 2048 }
  0x42   : > { %p663_p8 = scmp.lt.s32.totalorder %s929_s12, %s661_s9  ;;  %p664_p10 = scmp.lt.s32.totalorder %s662_s10, %s656_s8 }
  0x43   : > { %p659_p13 = pneg %p658_p12 }
  0x44   : > { %p665_p0 = por %p664_p10, %p663_p8 }
  0x46   : > { %p666_p2 = pnand %p665_p0, %p659_p13 }
  0x51   : > { %312 = vbcast.lane.b32.xlu1 %v544_v12, 256 }
  0x55   : > { %366 = vbcast.lane.b32.xlu1 %v545_v42, 256 }
  0x59   : > { %370 = vbcast.lane.b32.xlu1 %v545_v42, 264 }
  0xc8   : > { %v253_v17 = vpop.xlane.xlu0 %252 }
  0xc9   : > { %v259_v20 = vpop.xlane.xlu1 %258  ;;  %v263_v22 = vmul.f32 0.00390625, %v253_v17 }
  0xca   : > { %v265_v25 = vmul.f32 0.00390625, %v259_v20 }
  0xcb   : > { %v277_v31 = vrot.slane %v263_v22, %v276_v21 }
  0xcc   : > { %v256_v26 = vpop.xlane.xlu0 %255  ;;  %v289_v33 = vrot.slane %v265_v25, %v288_v24 }
  0xcd   : > { %v264_v28 = vmul.f32 0.00390625, %v256_v26  ;;  %v262_v29 = vpop.xlane.xlu1 %261 }
  0xce   : > { %v266_v30 = vmul.f32 0.00390625, %v262_v29 }
  0xcf   : > { %v282_v32 = vrot.slane %v264_v28, %v281_v23 }
  0xd0   : > { %v296_v34 = vrot.slane %v266_v30, %v295_v27 }
  0xd1   : > { %v284_v35 = vsel %vm283_vm0, %v282_v32, %v277_v31  ;;  %v313_v43 = vpop.permute.xlu1 %312 }
  0xd2   : > { %v291_v37 = vsel %vm290_vm1, %v289_v33, %v284_v35 }
  0xd3   : > { %v298_v38 = vsel %vm297_vm2, %v296_v34, %v291_v37 }
  0xd4   : > { %v300_v39 = vmul.f32 %v298_v38, %v267_v36 }
  0xd5   : > { %v367_v61 = vpop.permute.xlu1 %366 }
  0xd6   : > { %v302_v40 = vsel %vm301_vm3, %v300_v39, 0.0 }
  0xd7   : > { %303 = vadd.xlane.f32.xlu0 %v302_v40 }
  0xd9   : > { %v371_v62 = vpop.permute.xlu1 %370 }
 0x164   : > { %v304_v44 = vpop.xlane.xlu0 %303 }
 0x165   : > { %v315_v45 = vadd.f32 %v313_v43, %v304_v44 }
 0x167   : > { %v316_v46 = vmax.f32 %v315_v45, 0.0 }
 0x169   : > { %323 = vperm.xlu0 %608, %v316_v46  }
 0x1e8   : > { %v324_v47 = vpop.permute.xlu0 %323 }
 0x1e9   : > { %v328_v50 = vrot.slane %v324_v47, %v276_v21 }
 0x1eb   : > { %v343_v52 = vmul.f32 %v328_v50, %v318_v48  ;;  %v342_v53 = vmul.f32 %v328_v50, %v317_v49  ;;  %v344_v56 = vmul.f32 %v328_v50, %v319_v51  ;;  %v345_v59 = vmul.f32 %v328_v50, %v320_v57 }
 0x1ed   : > { %v350_v54 = vsel %vm346_vm4, %v343_v52, 0.0  ;;  %v347_v55 = vsel %vm346_vm4, %v342_v53, 0.0  ;;  %v353_v58 = vsel %vm346_vm4, %v344_v56, 0.0  ;;  %v356_v60 = vsel %vm346_vm4, %v345_v59, 0.0 }
 0x1ee   : > { %351 = vadd.xlane.f32.xlu0 %v350_v54  ;;  %348 = vadd.xlane.f32.xlu1 %v347_v55 }
 0x1f2   : > { %354 = vadd.xlane.f32.xlu1 %v353_v58 }
 0x1f6   : > { %357 = vadd.xlane.f32.xlu1 %v356_v60 }
 0x204   : > { %374 = vbcast.lane.b32.xlu0 %v545_v42, 272 }
 0x207   : > { %378 = vbcast.lane.b32.xlu1 %v545_v42, 280 }
 0x27b   : > { %v352_v63 = vpop.xlane.xlu0 %351  ;;  %v349_v3 = vpop.xlane.xlu1 %348 }
 0x27c   : > { %v385_v7 = vadd.f32 %v371_v62, %v352_v63  ;;  %v384_v10 = vadd.f32 %v367_v61, %v349_v3 }
 0x27e   : > { %v547_v11 = vmul.f32 -1.442695, %v385_v7  ;;  %v546_v12 = vmul.f32 -1.442695, %v384_v10 }
 0x27f   : > { %v375_v13 = vpop.permute.xlu0 %374  ;;  %v355_v14 = vpop.xlane.xlu1 %354 }
 0x280   : > { %610 = vpow2.f32 %v547_v11  ;;  %v386_v15 = vadd.f32 %v375_v13, %v355_v14 }
 0x281   : > { %612 = vpow2.f32 %v546_v12 }
 0x282   : > { %v548_v16 = vmul.f32 -1.442695, %v386_v15 }
 0x283   : > { %v358_v17 = vpop.xlane.xlu1 %357 }
 0x284   : > { %614 = vpow2.f32 %v548_v16 }
 0x287   : > { %v379_v18 = vpop.permute.xlu1 %378 }
 0x288   : > { %v387_v19 = vadd.f32 %v379_v18, %v358_v17 }
 0x28a   : > { %v611_v20 = vpop.eup %610  ;;  %v549_v21 = vmul.f32 -1.442695, %v387_v19 }
 0x28b   : > { %v613_v22 = vpop.eup %612  ;;  %v401_v24 = vadd.f32 1.0, %v611_v20 }
 0x28c   : > { %v400_v23 = vadd.f32 1.0, %v613_v22  ;;  %616 = vpow2.f32 %v549_v21 }
 0x28e   : > { %618 = vrcp.f32 %v400_v23  ;;  %v615_v25 = vpop.eup %614 }
 0x28f   : > { %620 = vrcp.f32 %v401_v24  ;;  %v402_v26 = vadd.f32 1.0, %v615_v25 }
 0x291   : > { %622 = vrcp.f32 %v402_v26 }
 0x296   : > { %v617_v27 = vpop.eup %616 }
 0x297   : > { %v403_v28 = vadd.f32 1.0, %v617_v27 }
 0x298   : > { %v619_v29 = vpop.eup %618 }
 0x299   : > { %624 = vrcp.f32 %v403_v28  ;;  %414 = vperm.xlu1 %609, %v619_v29   ;;  %v621_v30 = vpop.eup %620 }
 0x29b   : > { %v623_v31 = vpop.eup %622 }
 0x29d   : > { %419 = vperm.xlu1 %609, %v621_v30  }
 0x2a1   : > { %424 = vperm.xlu1 %609, %v623_v31  }
 0x2a3   : > { %v625_v32 = vpop.eup %624 }
 0x2a5   : > { %429 = vperm.xlu1 %609, %v625_v32  }
 0x318   : > { %v415_v33 = vpop.permute.xlu1 %414 }
 0x319   : > { %v432_v34 = vmul.f32 %v415_v33, %v875_v0  ;;  %v433_v35 = vmul.f32 %v415_v33, %v877_v1 }
 0x31b   : > { %440 = vst [vmem:[%s242_s29] sm:$0xff] %v432_v34  ;;  %441 = vst [vmem:[%s242_s29 + $0x8] sm:$0xff] %v433_v35 }
 0x31c   : > { %v420_v36 = vpop.permute.xlu1 %419 }
 0x31d   : > { %v434_v37 = vmul.f32 %v420_v36, %v885_v5  ;;  %v435_v38 = vmul.f32 %v420_v36, %v887_v6 }
 0x31f   : > { %442 = vst [vmem:[%s242_s29 + $0x10] sm:$0xff] %v434_v37  ;;  %443 = vst [vmem:[%s242_s29 + $0x18] sm:$0xff] %v435_v38 }
 0x320   : > { %v425_v39 = vpop.permute.xlu1 %424 }
 0x321   : > { %v436_v40 = vmul.f32 %v425_v39, %v879_v2  ;;  %v437_v0 = vmul.f32 %v425_v39, %v883_v4 }
 0x323   : > { %444 = vst [vmem:[%s242_s29 + $0x20] sm:$0xff] %v436_v40  ;;  %445 = vst [vmem:[%s242_s29 + $0x28] sm:$0xff] %v437_v0 }
 0x324   : > { %v430_v1 = vpop.permute.xlu1 %429 }
 0x325   : > { %v438_v5 = vmul.f32 %v430_v1, %v891_v8  ;;  %v439_v2 = vmul.f32 %v430_v1, %v893_v9 }
 0x327   : > { %446 = vst [vmem:[%s242_s29 + $0x30] sm:$0xff] %v438_v5  ;;  %447 = vst [vmem:[%s242_s29 + $0x38] sm:$0xff] %v439_v2 }
 0x328   : > { %669 = shalt.err (!%p666_p2)
}
 0x329   : > { %s670_s11 = scalar_lea.hbm %s934_s16, 1024  ;;  %s674_s26 = scalar_lea.hbm %s985_s5, 2048 }
 0x32a   : > { %p671_p4 = scmp.ne.s32.totalorder %s934_s16, %s670_s11  ;;  %p675_p9 = scmp.lt.u32.totalorder %s934_s16, %s985_s5 }
 0x32b   : > { %p676_p1 = scmp.lt.u32.totalorder %s674_s26, %s670_s11  ;;  %p678_p6 = scmp.lt.u32.totalorder %s670_s11, %s934_s16 }
 0x32c   : > { %p672_p5 = pnand %p671_p4, %p992_p11 }
 0x32d   : > { %p677_p3 = por %p676_p1, %p675_p9 }
 0x32e   : > { %p673_p7 = pneg %p672_p5 }
 0x32f   : > { %p679_p12 = por %p678_p6, %p677_p3 }
 0x331   : > { %p680_p13 = pnand %p679_p12, %p673_p7 }
 0x333   : > { %683 = shalt.err (!%p680_p13)
}
 0x334   : > { %s729_s14 = smov 256   ;;  %s730_s25 = smov 16  }
 0x335   : > { %559 = dma.vmem_to_hbm [thread:$0]  (%p992_p11), %s929_s12, 1024, %s934_s16, %s449_s22, %s729_s14, %s729_s14, %s730_s25  }
 0x336 PF: > { %s477_s15 = sand.u32 1, %s710_s18   ;;  %p993_p8 = scmp.ne.s32.totalorder %s990_s6, 0 }
 0x337   : > { %p994_p10 = scmp.ge.s32.totalorder %s722_s21, 2  ;;  %s478_s8 = scalar_lea.sflag [#allocation4], %s477_s15 }
 0x339   : > { %p566_p0 = pnand %p994_p10, %p993_p8 }
 0x33b   : > { %705 = dma.done.wait (!%p566_p0), %s478_s8, 1024  }
 0x33c   : > { %707 = vsyncadd (!%p566_p0), %s478_s8, 4294966272  ;;  %p18_p2 = scmp.ge.s32.totalorder %s786_s24, 4   ;;  %s995_s18 = smov %s714_s19 }
 0x33d   : > { %s996_s19 = smov %s718_s20  ;;  %s997_s20 = smov %s798_s27 }
 0x33e   : > { %s998_s21 = smov %s786_s24  ;;  %20 = sbr.rel (!%p18_p2) target bundleno = 5 (0x5), region = 85 }
 0x345   :  { %483 = vsyncpa [#allocation3], 1 }
 0x346   :  { %485 = vsyncpa [#allocation3 + $0x1], 1 }
 0x347   :  { %486 = vsyncpa [#allocation4], 1 }
 0x348   :  { %488 = vsyncpa [#allocation4 + $0x1], 1 }

</bundles_post_ra>
